<compile_context>
chip_gen: v6e
topology: v6e:2x2x1
jax: 0.10.0
libtpu: 0.0.40
codegen_flags: <defaults>
</compile_context>

<pallas_src>
import jax
import jax.numpy as jnp
from jax.experimental import pallas as pl
from jax.experimental.pallas import tpu as pltpu

IN_DIM = 28 * 28   # 784
HID_DIM = 128
OUT_DIM = 10
PAD_OUT = 128      # lane-dense padded output width
TM_MAX = 1024      # batch-tile cap (v7x 64 MiB VMEM safe, v5e 16 MiB scoped safe)


def _round_up(x, m):
    return ((x + m - 1) // m) * m


def mlp_logsoftmax_kernel(x_ref, w1_ref, b1_ref, w2_ref, b2_ref, o_ref):
    # x_ref:  (TM, 784)  f32        w1_ref: (784, 128) bf16
    # b1_ref: (1, 128)   f32        w2_ref: (128, 128) f32 (cols 10.. are 0)
    # b2_ref: (1, 128)   f32 (cols 10.. are -1e30)
    # o_ref:  (TM, 128)  f32
    x_bf16 = x_ref[...].astype(jnp.bfloat16)

    # Linear(784 -> 128) + bias + ReLU.  bf16 operands on the MXU, f32 accum.
    h = jnp.dot(x_bf16, w1_ref[...], preferred_element_type=jnp.float32)
    h = jnp.maximum(h + b1_ref[...], 0.0)

    # Linear(128 -> 128 padded).  Padded weight columns are zero, padded bias
    # columns are -1e30, so padded logits contribute nothing to the logsumexp.
    logits = jnp.dot(h, w2_ref[...], preferred_element_type=jnp.float32)
    logits = logits + b2_ref[...]

    # Numerically-stable log_softmax along the lane axis (128-wide, lane dense).
    m = jnp.max(logits, axis=-1, keepdims=True)
    shifted = logits - m
    lse = jnp.log(jnp.sum(jnp.exp(shifted), axis=-1, keepdims=True))
    o_ref[...] = (shifted - lse).astype(o_ref.dtype)


def neural_network_forward(x_nchw, w1, b1, w2, b2, tm=None):
    """x_nchw: (B, 1, 28, 28) float32 -> log-probabilities (B, 10)."""
    B = x_nchw.shape[0]
    x_flat = x_nchw.reshape(B, -1).astype(jnp.float32)    # nn.Flatten()
    assert x_flat.shape[1] == IN_DIM

    # Batch tile: multiple of 8 (f32 sublane), capped for VMEM on all chips.
    if tm is None:
        tm = min(TM_MAX, _round_up(B, 8))
    b_pad = _round_up(B, tm)
    if b_pad != B:
        x_flat = jnp.pad(x_flat, ((0, b_pad - B), (0, 0)))

    # Weight/bias prep (constant-foldable when params are static inside a jit).
    w1_bf16 = w1.astype(jnp.bfloat16)
    b1_2d = b1.reshape(1, HID_DIM).astype(jnp.float32)
    w2_pad = jnp.zeros((HID_DIM, PAD_OUT), jnp.float32).at[:, :OUT_DIM].set(
        w2.astype(jnp.float32))
    b2_pad = jnp.full((1, PAD_OUT), -1e30, jnp.float32).at[0, :OUT_DIM].set(
        b2.astype(jnp.float32))

    grid = (b_pad // tm,)

    cost = pl.CostEstimate(
        flops=2 * b_pad * IN_DIM * HID_DIM + 2 * b_pad * HID_DIM * PAD_OUT,
        transcendentals=b_pad * PAD_OUT,                     # exp in log_softmax
        bytes_accessed=(b_pad * IN_DIM * 4                   # x (f32 in HBM)
                        + IN_DIM * HID_DIM * 2               # w1 (bf16)
                        + HID_DIM * PAD_OUT * 4 + PAD_OUT * 8
                        + b_pad * PAD_OUT * 4),              # output
    )

    out_padded = pl.pallas_call(
        mlp_logsoftmax_kernel,
        out_shape=jax.ShapeDtypeStruct((b_pad, PAD_OUT), jnp.float32),
        grid=grid,
        in_specs=[
            pl.BlockSpec((tm, IN_DIM), lambda i: (i, 0)),        # x tile moves
            pl.BlockSpec((IN_DIM, HID_DIM), lambda i: (0, 0)),   # w1 resident
            pl.BlockSpec((1, HID_DIM), lambda i: (0, 0)),        # b1 resident
            pl.BlockSpec((HID_DIM, PAD_OUT), lambda i: (0, 0)),  # w2 resident
            pl.BlockSpec((1, PAD_OUT), lambda i: (0, 0)),        # b2 resident
        ],
        out_specs=pl.BlockSpec((tm, PAD_OUT), lambda i: (i, 0)),
        compiler_params=pltpu.CompilerParams(
            dimension_semantics=("parallel",)),                  # v7x megacore
        cost_estimate=cost,
    )(x_flat, w1_bf16, b1_2d, w2_pad, b2_pad)

    # Slice padded batch rows and padded output lanes back off.
    return out_padded[:B, :OUT_DIM]


def init_params(key):
    """Deterministic init matching nn.Linear shapes (Kaiming-uniform-ish)."""
    k1, k2, k3, k4 = jax.random.split(key, 4)
    lim1 = 1.0 / jnp.sqrt(IN_DIM)
    lim2 = 1.0 / jnp.sqrt(HID_DIM)
    # Stored as (in, out) so the kernel does x @ W (PyTorch stores (out, in)).
    w1 = jax.random.uniform(k1, (IN_DIM, HID_DIM), jnp.float32, -lim1, lim1)
    b1 = jax.random.uniform(k2, (HID_DIM,), jnp.float32, -lim1, lim1)
    w2 = jax.random.uniform(k3, (HID_DIM, OUT_DIM), jnp.float32, -lim2, lim2)
    b2 = jax.random.uniform(k4, (OUT_DIM,), jnp.float32, -lim2, lim2)
    return w1, b1, w2, b2


def reference_forward(x_nchw, w1, b1, w2, b2):
    """Pure-JAX f32 reference of the PyTorch module."""
    x = x_nchw.reshape(x_nchw.shape[0], -1)
    h = jnp.maximum(x @ w1 + b1, 0.0)
    logits = h @ w2 + b2
    return jax.nn.log_softmax(logits, axis=1)


if __name__ == "__main__":
    key = jax.random.PRNGKey(0)
    kx, kp = jax.random.split(key)

    B = 8
    x = jax.random.normal(kx, (B, 1, 28, 28), dtype=jnp.float32)  # NCHW
    w1, b1, w2, b2 = init_params(kp)

    out = neural_network_forward(x, w1, b1, w2, b2)
    out = jax.block_until_ready(out)

    assert out.shape == (B, OUT_DIM)

    # Sanity 1: log-probs normalize to 1 per row (exact regardless of bf16).
    row_sums = jnp.sum(jnp.exp(out), axis=1)
    assert bool(jnp.all(jnp.abs(row_sums - 1.0) < 1e-4))

    # Sanity 2: close to the f32 reference (loose tol for bf16 first matmul).
    ref = reference_forward(x, w1, b1, w2, b2)
    assert bool(jnp.max(jnp.abs(out - ref)) < 5e-2)

    print("KERNEL_OK")
</pallas_src>

<mosaic_0001>
module attributes {stable_mosaic.version = 11 : i64} {
  func.func @mlp_logsoftmax_kernel(%arg0: i32, %arg1: memref<8x784xf32, #tpu.memory_space<vmem>>, %arg2: memref<784x128xbf16, #tpu.memory_space<vmem>>, %arg3: memref<1x128xf32, #tpu.memory_space<vmem>>, %arg4: memref<128x128xf32, #tpu.memory_space<vmem>>, %arg5: memref<1x128xf32, #tpu.memory_space<vmem>>, %arg6: memref<8x128xf32, #tpu.memory_space<vmem>>) attributes {dimension_semantics = [#tpu.dimension_semantics<parallel>], iteration_bounds = array<i64: 1>, scalar_prefetch = 0 : i64, scratch_operands = 0 : i64, tpu.core_type = #tpu.core_type<tc>, window_params = [{transform_indices = @transform_0, window_bounds = array<i64: 8, 784>}, {pipeline_mode = #tpu.pipeline_mode<synchronous>, transform_indices = @transform_1, window_bounds = array<i64: 784, 128>}, {pipeline_mode = #tpu.pipeline_mode<synchronous>, transform_indices = @transform_2, window_bounds = array<i64: 1, 128>}, {pipeline_mode = #tpu.pipeline_mode<synchronous>, transform_indices = @transform_3, window_bounds = array<i64: 128, 128>}, {pipeline_mode = #tpu.pipeline_mode<synchronous>, transform_indices = @transform_4, window_bounds = array<i64: 1, 128>}, {transform_indices = @transform_5, window_bounds = array<i64: 8, 128>}]} {
    %c0 = arith.constant 0 : index
    %c0_0 = arith.constant 0 : index
    %0 = vector.load %arg1[%c0, %c0_0] : memref<8x784xf32, #tpu.memory_space<vmem>>, vector<8x784xf32>
    %1 = arith.truncf %0 : vector<8x784xf32> to vector<8x784xbf16>
    %c0_1 = arith.constant 0 : index
    %c0_2 = arith.constant 0 : index
    %2 = vector.load %arg2[%c0_1, %c0_2] : memref<784x128xbf16, #tpu.memory_space<vmem>>, vector<784x128xbf16>
    %cst = arith.constant dense<0.000000e+00> : vector<8x128xf32>
    %3 = tpu.matmul %1, %2, %cst {dimension_numbers = #tpu.dot_dimension_numbers<[1], [0], [0], [1], [0, 0, 1, 1], [], []>} : vector<8x784xbf16>, vector<784x128xbf16>, vector<8x128xf32> -> vector<8x128xf32>
    %c0_3 = arith.constant 0 : index
    %c0_4 = arith.constant 0 : index
    %4 = vector.load %arg3[%c0_3, %c0_4] : memref<1x128xf32, #tpu.memory_space<vmem>>, vector<1x128xf32>
    %5 = vector.broadcast %4 : vector<1x128xf32> to vector<8x128xf32>
    %6 = arith.addf %3, %5 : vector<8x128xf32>
    %cst_5 = arith.constant 0.000000e+00 : f32
    %7 = vector.broadcast %cst_5 : f32 to vector<8x128xf32>
    %8 = arith.maximumf %6, %7 : vector<8x128xf32>
    %c0_6 = arith.constant 0 : index
    %c0_7 = arith.constant 0 : index
    %9 = vector.load %arg4[%c0_6, %c0_7] : memref<128x128xf32, #tpu.memory_space<vmem>>, vector<128x128xf32>
    %cst_8 = arith.constant dense<0.000000e+00> : vector<8x128xf32>
    %10 = tpu.matmul %8, %9, %cst_8 {dimension_numbers = #tpu.dot_dimension_numbers<[1], [0], [0], [1], [0, 0, 1, 1], [], []>} : vector<8x128xf32>, vector<128x128xf32>, vector<8x128xf32> -> vector<8x128xf32>
    %c0_9 = arith.constant 0 : index
    %c0_10 = arith.constant 0 : index
    %11 = vector.load %arg5[%c0_9, %c0_10] : memref<1x128xf32, #tpu.memory_space<vmem>>, vector<1x128xf32>
    %12 = vector.broadcast %11 : vector<1x128xf32> to vector<8x128xf32>
    %13 = arith.addf %10, %12 : vector<8x128xf32>
    %cst_11 = arith.constant dense<0xFF800000> : vector<8xf32>
    %14 = vector.multi_reduction <maximumf>, %13, %cst_11 [1] : vector<8x128xf32> to vector<8xf32>
    %15 = vector.shape_cast %14 : vector<8xf32> to vector<8x1xf32>
    %16 = vector.broadcast %15 : vector<8x1xf32> to vector<8x128xf32>
    %17 = arith.subf %13, %16 : vector<8x128xf32>
    %18 = math.exp %17 : vector<8x128xf32>
    %cst_12 = arith.constant dense<0.000000e+00> : vector<8xf32>
    %19 = vector.multi_reduction <add>, %18, %cst_12 [1] : vector<8x128xf32> to vector<8xf32>
    %20 = vector.shape_cast %19 : vector<8xf32> to vector<8x1xf32>
    %21 = math.log %20 : vector<8x1xf32>
    %22 = vector.broadcast %21 : vector<8x1xf32> to vector<8x128xf32>
    %23 = arith.subf %17, %22 : vector<8x128xf32>
    %c0_13 = arith.constant 0 : index
    %c0_14 = arith.constant 0 : index
    %24 = vector.load %arg6[%c0_13, %c0_14] : memref<8x128xf32, #tpu.memory_space<vmem>>, vector<8x128xf32>
    tpu.vector_store %arg6[%c0_13, %c0_14], %23 {strides = array<i32>} : memref<8x128xf32, #tpu.memory_space<vmem>>, vector<8x128xf32>,
    return
  }
  func.func @transform_0(%arg0: i32) -> (i32, i32) {
    %c0_i32 = arith.constant 0 : i32
    %c0_i32_0 = arith.constant 0 : i32
    return %arg0, %c0_i32 : i32, i32
  }
  func.func @transform_1(%arg0: i32) -> (i32, i32) {
    %c0_i32 = arith.constant 0 : i32
    %c0_i32_0 = arith.constant 0 : i32
    %c0_i32_1 = arith.constant 0 : i32
    return %c0_i32, %c0_i32_0 : i32, i32
  }
  func.func @transform_2(%arg0: i32) -> (i32, i32) {
    %c0_i32 = arith.constant 0 : i32
    %c0_i32_0 = arith.constant 0 : i32
    %c0_i32_1 = arith.constant 0 : i32
    return %c0_i32, %c0_i32_0 : i32, i32
  }
  func.func @transform_3(%arg0: i32) -> (i32, i32) {
    %c0_i32 = arith.constant 0 : i32
    %c0_i32_0 = arith.constant 0 : i32
    %c0_i32_1 = arith.constant 0 : i32
    return %c0_i32, %c0_i32_0 : i32, i32
  }
  func.func @transform_4(%arg0: i32) -> (i32, i32) {
    %c0_i32 = arith.constant 0 : i32
    %c0_i32_0 = arith.constant 0 : i32
    %c0_i32_1 = arith.constant 0 : i32
    return %c0_i32, %c0_i32_0 : i32, i32
  }
  func.func @transform_5(%arg0: i32) -> (i32, i32) {
    %c0_i32 = arith.constant 0 : i32
    %c0_i32_0 = arith.constant 0 : i32
    return %arg0, %c0_i32 : i32, i32
  }
}

</mosaic_0001>

<bundles_post_ra>
// kernel: tpu_custom_call.1
= control target key start
LH: loop header
LB: loop body
LE: loop exit
PB: predicated region body
PF: predicated region fallthrough
CT: control target
= control target key end

     0   :  { %10 = vsyncpa [#allocation3], 0  ;;  %s1165_s0 = inlined_call_operand.hbm [shape: f32[8,784], index: 0, kind: input, shape index: {}]   ;;  %s1166_s1 = inlined_call_operand.hbm [shape: bf16[784,128], index: 1, kind: input, shape index: {}]   ;;  %s1167_s2 = inlined_call_operand.vmem [shape: f32[1,128], index: 2, kind: input, shape index: {}]   ;;  %s1168_s3 = inlined_call_operand.hbm [shape: f32[128,128], index: 3, kind: input, shape index: {}]   ;;  %s1169_s4 = inlined_call_operand.vmem [shape: f32[1,128], index: 4, kind: input, shape index: {}]   ;;  %s1170_s5 = inlined_call_operand.hbm [shape: f32[8,128], index: 5, kind: output, shape index: {}]  }
   0x1   :  { %11 = vsyncpa [#allocation6], 0 }
   0x2   :  { %12 = vsyncpa [#allocation4], 0  ;;  %s1086_s18 = smov [#allocation5]  }
   0x3   :  { %s28_s19 = sshll.u32 %s1086_s18, 4  ;;  %s29_s19 = int_to_ptr.vmem [resolvable:$true] %s28_s19 }
   0x4   :  { %s1008_s20 = scalar_lea.vmem %s29_s19, 6272  ;;  %p1013_p1 = scmp.lt.s32.totalorder %s29_s19, %s29_s19 }
   0x5   :  { %p1009_p0 = scmp.ne.s32.totalorder %s29_s19, %s1008_s20  ;;  %p1014_p2 = scmp.lt.s32.totalorder %s1008_s20, %s1008_s20 }
   0x7   :  { %p1015_p3 = por %p1014_p2, %p1013_p1 }
   0x9   :  { %p1016_p4 = pnand %p1015_p3, %p1009_p0 }
   0xb   :  { %1019 = shalt.err (!%p1016_p4)
}
   0xc   :  { %s1087_s21 = smov 64   ;;  %s1088_s22 = smov 4  }
   0xd   :  { %34 = dma.hbm_to_vmem [thread:$0]  %s1166_s1, 6272, %s29_s19, [#allocation6], %s1087_s21, %s1087_s21, %s1088_s22  }
   0xe   :  { %s1089_s25 = smov [#allocation2]   ;;  %s1090_s27 = smov [#allocation7]  }
   0xf   :  { %s19_s26 = sshll.u32 %s1089_s25, 4  ;;  %s42_s28 = sshll.u32 %s1090_s27, 4  ;;  %s20_s26 = int_to_ptr.vmem [resolvable:$true] %s19_s26  ;;  %s43_s28 = int_to_ptr.vmem [resolvable:$true] %s42_s28 }
  0x10   :  { %s1028_s29 = scalar_lea.vmem %s20_s26, 896  ;;  %p1033_p6 = scmp.lt.s32.totalorder %s20_s26, %s20_s26 }
  0x11   :  { %p1029_p5 = scmp.ne.s32.totalorder %s20_s26, %s1028_s29  ;;  %p1034_p7 = scmp.lt.s32.totalorder %s1028_s29, %s1028_s29 }
  0x13   :  { %p1035_p8 = por %p1034_p7, %p1033_p6 }
  0x15   :  { %p1036_p9 = pnand %p1035_p8, %p1029_p5 }
  0x17   :  { %1039 = shalt.err (!%p1036_p9)
}
  0x18   :  { %22 = dma.hbm_to_vmem [thread:$0]  %s1165_s0, 896, %s20_s26, [#allocation3]  }
  0x19   :  { %s1048_s7 = scalar_lea.vmem %s43_s28, 2048  ;;  %p1053_p11 = scmp.lt.s32.totalorder %s43_s28, %s43_s28 }
  0x1a   :  { %p1049_p10 = scmp.ne.s32.totalorder %s43_s28, %s1048_s7  ;;  %p1054_p12 = scmp.lt.s32.totalorder %s1048_s7, %s1048_s7 }
  0x1c   :  { %p1055_p13 = por %p1054_p12, %p1053_p11 }
  0x1e   :  { %p1056_p0 = pnand %p1055_p13, %p1049_p10 }
  0x20   :  { %1059 = shalt.err (!%p1056_p0)
}
  0x21   :  { %s1091_s1 = smov 128   ;;  %s1092_s8 = smov 8  }
  0x22   :  { %48 = dma.hbm_to_vmem [thread:$0]  %s1168_s3, 2048, %s43_s28, [#allocation6], %s1091_s1, %s1091_s1, %s1092_s8  }
  0x23   :  { %1080 = dma.done.wait [#allocation3], 896  }
  0x24   :  { %1081 = vsyncadd [#allocation3], 4294966400 }
  0x25   :  { %1082 = dma.done.wait [#allocation6], 8320  }
  0x26   :  { %1083 = vsyncadd [#allocation6], 4294958976  ;;  %v947_v0 = vld [vmem:[#allocation5 + $0x78] sm:$0xff]   ;;  %v951_v4 = vld [vmem:[#allocation5 + $0x70] sm:$0xff]   ;;  %v1093_v44 = vmov 0.0   ;;  %vm1094_vm0 = vmmov 0  }
  0x27   :  { %v948_v1 = vld [vmem:[#allocation5 + $0x38] sm:$0xff]   ;;  %811 = vmatprep.subr.bf16.mxu0 %v947_v0  ;;  %v952_v5 = vld [vmem:[#allocation5 + $0x30] sm:$0xff]   ;;  %v955_v8 = vld [vmem:[#allocation5 + $0x68] sm:$0xff]   ;;  %vm474_vm1 = vcmask 130048  }
  0x28   :  { %v949_v2 = vld [vmem:[#allocation5 + $0xf8] sm:$0xff]   ;;  %812 = vmatpush3.bf16.msra.mxu0 %v948_v1  ;;  %v953_v6 = vld [vmem:[#allocation5 + $0xf0] sm:$0xff]   ;;  %v956_v9 = vld [vmem:[#allocation5 + $0x28] sm:$0xff]  }
  0x29   :  { %v950_v3 = vld [vmem:[#allocation5 + $0xb8] sm:$0xff]   ;;  %833 = vmatprep.subr.bf16.mxu1 %v949_v2  ;;  %813 = vmatprep.subr.bf16.mxu0 %v951_v4  ;;  %v954_v7 = vld [vmem:[#allocation5 + $0xb0] sm:$0xff]   ;;  %v957_v10 = vld [vmem:[#allocation5 + $0xe8] sm:$0xff]  }
  0x2a   :  { %834 = vmatpush3.bf16.msra.mxu1 %v950_v3  ;;  %v958_v11 = vld [vmem:[#allocation5 + $0xa8] sm:$0xff]   ;;  %v959_v12 = vld [vmem:[#allocation5 + $0x60] sm:$0xff]   ;;  %v963_v16 = vld [vmem:[#allocation5 + $0x58] sm:$0xff]  }
  0x2b   :  { %835 = vmatprep.subr.bf16.mxu1 %v953_v6  ;;  %v960_v13 = vld [vmem:[#allocation5 + $0x20] sm:$0xff]   ;;  %v964_v17 = vld [vmem:[#allocation5 + $0x18] sm:$0xff]   ;;  %v967_v20 = vld [vmem:[#allocation5 + $0x50] sm:$0xff]  }
  0x2c   :  { %814 = vmatpush3.bf16.msra.mxu0 %v952_v5  ;;  %v961_v14 = vld [vmem:[#allocation5 + $0xe0] sm:$0xff]   ;;  %v965_v18 = vld [vmem:[#allocation5 + $0xd8] sm:$0xff]   ;;  %v968_v21 = vld [vmem:[#allocation5 + $0x10] sm:$0xff]  }
  0x2d   :  { %815 = vmatprep.subr.bf16.mxu0 %v955_v8  ;;  %v962_v15 = vld [vmem:[#allocation5 + $0xa0] sm:$0xff]   ;;  %v966_v19 = vld [vmem:[#allocation5 + $0x98] sm:$0xff]   ;;  %v969_v22 = vld [vmem:[#allocation5 + $0xd0] sm:$0xff]  }
  0x2e   :  { %836 = vmatpush3.bf16.msra.mxu1 %v954_v7  ;;  %v970_v23 = vld [vmem:[#allocation5 + $0x90] sm:$0xff]   ;;  %v971_v24 = vld [vmem:[#allocation5 + $0x48] sm:$0xff]   ;;  %v975_v28 = vld [vmem:[#allocation5 + $0x40] sm:$0xff]  }
  0x2f   :  { %837 = vmatprep.subr.bf16.mxu1 %v957_v10  ;;  %v972_v25 = vld [vmem:[#allocation5 + $0x8] sm:$0xff]   ;;  %v976_v29 = vld [vmem:[#allocation5] sm:$0xff]   ;;  %v62_v31 = vld [vmem:[#allocation2 + $0x8] sm:$0xff] }
  0x30   :  { %816 = vmatpush3.bf16.msra.mxu0 %v956_v9  ;;  %v973_v26 = vld [vmem:[#allocation5 + $0xc8] sm:$0xff]   ;;  %v977_v30 = vld [vmem:[#allocation5 + $0xc0] sm:$0xff]   ;;  %v69_v32 = vpack.c.bf16 %v62_v31, %v62_v31  ;;  %v979_v36 = vld [vmem:[#allocation5 + $0x178] sm:$0xff]  }
  0x31   :  { %817 = vmatprep.subr.bf16.mxu0 %v959_v12  ;;  %v974_v27 = vld [vmem:[#allocation5 + $0x88] sm:$0xff]   ;;  %v978_v33 = vld [vmem:[#allocation5 + $0x80] sm:$0xff]   ;;  %v980_v39 = vld [vmem:[#allocation5 + $0x138] sm:$0xff]  }
  0x32   :  { %838 = vmatpush3.bf16.msra.mxu1 %v958_v11  ;;  %v61_v34 = vld [vmem:[#allocation2] sm:$0xff]  ;;  %v64_v37 = vld [vmem:[#allocation2 + $0x18] sm:$0xff]  ;;  %510 = vmatprep.mubr.bf16.mxu0 %v69_v32  ;;  %v63_v40 = vld [vmem:[#allocation2 + $0x10] sm:$0xff] }
  0x33   :  { %839 = vmatprep.subr.bf16.mxu1 %v961_v14  ;;  %v68_v35 = vpack.c.bf16 %v61_v34, %v61_v34  ;;  %v71_v38 = vpack.c.bf16 %v64_v37, %v64_v37  ;;  %v70_v41 = vpack.c.bf16 %v63_v40, %v63_v40  ;;  %v981_v42 = vld [vmem:[#allocation5 + $0x170] sm:$0xff]   ;;  %v983_v45 = vld [vmem:[#allocation5 + $0x168] sm:$0xff]   ;;  %v985_v47 = vld [vmem:[#allocation5 + $0x160] sm:$0xff]  }
  0x34   :  { %818 = vmatpush3.bf16.msra.mxu0 %v960_v13  ;;  %v982_v43 = vld [vmem:[#allocation5 + $0x130] sm:$0xff]   ;;  %v984_v46 = vld [vmem:[#allocation5 + $0x128] sm:$0xff]   ;;  %v986_v48 = vld [vmem:[#allocation5 + $0x120] sm:$0xff]  }
  0x35   :  { %819 = vmatprep.subr.bf16.mxu0 %v963_v16  ;;  %550 = vmatprep.mubr.bf16.mxu1 %v71_v38  ;;  %v987_v49 = vld [vmem:[#allocation5 + $0x158] sm:$0xff]   ;;  %v989_v51 = vld [vmem:[#allocation5 + $0x150] sm:$0xff]   ;;  %v995_v52 = vld [vmem:[#allocation5 + $0x180] sm:$0xff]  }
  0x36   :  { %840 = vmatpush3.bf16.msra.mxu1 %v962_v15  ;;  %v988_v50 = vld [vmem:[#allocation5 + $0x118] sm:$0xff]   ;;  %v66_v53 = vld [vmem:[#allocation2 + $0x28] sm:$0xff]  ;;  %v991_v58 = vld [vmem:[#allocation5 + $0x148] sm:$0xff]  }
  0x37   :  { %841 = vmatprep.subr.bf16.mxu1 %v965_v18  ;;  %v73_v54 = vpack.c.bf16 %v66_v53, %v66_v53  ;;  %v67_v55 = vld [vmem:[#allocation2 + $0x30] sm:$0xff]  ;;  %v990_v56 = vld [vmem:[#allocation5 + $0x110] sm:$0xff]   ;;  %v992_v59 = vld [vmem:[#allocation5 + $0x108] sm:$0xff]  }
  0x38   :  { %820 = vmatpush3.bf16.msra.mxu0 %v964_v17  ;;  %v74_v57 = vpack.c.bf16 %v67_v55, %v67_v55  ;;  %v993_v60 = vld [vmem:[#allocation5 + $0x140] sm:$0xff]   ;;  %v65_v62 = vld [vmem:[#allocation2 + $0x20] sm:$0xff]  ;;  %v653_v1 = vld [vmem:[#allocation7 + $0x70] sm:$0xff] }
  0x39   :  { %821 = vmatprep.subr.bf16.mxu0 %v967_v20  ;;  %v994_v61 = vld [vmem:[#allocation5 + $0x100] sm:$0xff]   ;;  %v72_v63 = vpack.c.bf16 %v65_v62, %v65_v62  ;;  %v652_v2 = vld [vmem:[#allocation7 + $0x68] sm:$0xff]  ;;  %v651_v3 = vld [vmem:[#allocation7 + $0x60] sm:$0xff] }
  0x3a   :  { %842 = vmatpush3.bf16.msra.mxu1 %v966_v19  ;;  %v654_v0 = vld [vmem:[#allocation7 + $0x78] sm:$0xff]  ;;  %v649_v5 = vld [vmem:[#allocation7 + $0x50] sm:$0xff]  ;;  %v648_v6 = vld [vmem:[#allocation7 + $0x48] sm:$0xff] }
  0x3b   :  { %843 = vmatprep.subr.bf16.mxu1 %v969_v22  ;;  %v650_v4 = vld [vmem:[#allocation7 + $0x58] sm:$0xff]  ;;  %v647_v7 = vld [vmem:[#allocation7 + $0x40] sm:$0xff]  ;;  %v645_v9 = vld [vmem:[#allocation7 + $0x30] sm:$0xff] }
  0x3c   :  { %822 = vmatpush3.bf16.msra.mxu0 %v968_v21  ;;  %v646_v8 = vld [vmem:[#allocation7 + $0x38] sm:$0xff]  ;;  %v644_v10 = vld [vmem:[#allocation7 + $0x28] sm:$0xff]  ;;  %v643_v11 = vld [vmem:[#allocation7 + $0x20] sm:$0xff] }
  0x3d   :  { %823 = vmatprep.subr.bf16.mxu0 %v971_v24  ;;  %v642_v12 = vld [vmem:[#allocation7 + $0x18] sm:$0xff]  ;;  %v641_v13 = vld [vmem:[#allocation7 + $0x10] sm:$0xff]  ;;  %v640_v14 = vld [vmem:[#allocation7 + $0x8] sm:$0xff] }
  0x3e   :  { %844 = vmatpush3.bf16.msra.mxu1 %v970_v23  ;;  %v639_v15 = vld [vmem:[#allocation7] sm:$0xff] }
  0x3f   :  { %845 = vmatprep.subr.bf16.mxu1 %v973_v26 }
  0x40   :  { %824 = vmatpush3.bf16.msra.mxu0 %v972_v25 }
  0x41   :  { %825 = vmatprep.subr.bf16.mxu0 %v975_v28 }
  0x42   :  { %846 = vmatpush3.bf16.msra.mxu1 %v974_v27 }
  0x43   :  { %847 = vmatprep.subr.bf16.mxu1 %v977_v30 }
  0x44   :  { %826 = vmatpush3.bf16.msra.mxu0 %v976_v29  ;;  %v759_v29 = vld [vmem:[%s1167_s2] ss:$0 sm:$0xff]  ;;  %s1095_s2 = smov [#allocation8]  }
  0x45   :  { %855 = vmatprep.subr.bf16.mxu0 %v979_v36  ;;  %s749_s13 = sshll.u32 %s1095_s2, 4  ;;  %s750_s13 = int_to_ptr.vmem [resolvable:$true] %s749_s13 }
  0x46   :  { %848 = vmatpush3.bf16.msra.mxu1 %v978_v33  ;;  %p1065_p2 = scmp.lt.s32.totalorder %s750_s13, %s750_s13 }
  0x47   :  { %511 = vmatmul.mubr.bf16.vlgmr.msra.gmra.mxu0 %v68_v35  ;;  %896 = vmatprep.subr.bf16.mxu1 %v1093_v44 }
  0x48   :  { %856 = vmatpush3.bf16.msra.mxu0 %v980_v39  ;;  %590 = vmatprep.mubr.bf16.mxu0 %v73_v54 }
  0x49   :  { %551 = vmatmul.mubr.bf16.vlgmr.msra.gmra.mxu1 %v70_v41  ;;  %857 = vmatprep.subr.bf16.mxu0 %v981_v42  ;;  %v810_v41 = vld [vmem:[%s1169_s4] ss:$0 sm:$0xff]  ;;  %s1060_s4 = scalar_lea.vmem %s750_s13, 128 }
  0x4a   :  { %898 = vmatprep.mubr.msk.bf16.mxu1 %vm1094_vm0, %v1093_v44  ;;  %897 = vmatpush3.bf16.msra.mxu1 %v995_v52  ;;  %p1061_p1 = scmp.ne.s32.totalorder %s750_s13, %s1060_s4  ;;  %p1066_p3 = scmp.lt.s32.totalorder %s1060_s4, %s1060_s4 }
  0x4b   :  { %902 = vmatprep.subr.mxu1 %v1093_v44 }
  0x4c   :  { %858 = vmatpush3.bf16.msra.mxu0 %v982_v43  ;;  %p1067_p4 = por %p1066_p3, %p1065_p2 }
  0x4d   :  { %859 = vmatprep.subr.bf16.mxu0 %v983_v45 }
  0x4e   :  { %p1068_p5 = pnand %p1067_p4, %p1061_p1 }
  0x50   :  { %860 = vmatpush3.bf16.msra.mxu0 %v984_v46 }
  0x51   :  { %861 = vmatprep.subr.bf16.mxu0 %v985_v47  ;;  %899 = vmatmul.mubr.msk.bf16.vlgmr.msra.gmra.mxu1 %vm474_vm1, %v74_v57 }
  0x52   :  { %934 = vmatprep.mubr.msk.f32.mxu1 %vm1094_vm0, %v1093_v44  ;;  %903 = vmatpush3.msra.mxu1 %v654_v0 }
  0x53   :  { %904 = vmatprep.subr.mxu1 %v1093_v44 }
  0x54   :  { %862 = vmatpush3.bf16.msra.mxu0 %v986_v48  ;;  %905 = vmatpush3.msra.mxu1 %v653_v1 }
  0x55   :  { %863 = vmatprep.subr.bf16.mxu0 %v987_v49  ;;  %906 = vmatprep.subr.mxu1 %v1093_v44 }
  0x56   :  { %907 = vmatpush3.msra.mxu1 %v652_v2 }
  0x57   :  { %908 = vmatprep.subr.mxu1 %v1093_v44 }
  0x58   :  { %864 = vmatpush3.bf16.msra.mxu0 %v988_v50  ;;  %909 = vmatpush3.msra.mxu1 %v651_v3 }
  0x59   :  { %865 = vmatprep.subr.bf16.mxu0 %v989_v51  ;;  %910 = vmatprep.subr.mxu1 %v1093_v44 }
  0x5a   :  { %911 = vmatpush3.msra.mxu1 %v650_v4 }
  0x5b   :  { %912 = vmatprep.subr.mxu1 %v1093_v44 }
  0x5c   :  { %866 = vmatpush3.bf16.msra.mxu0 %v990_v56  ;;  %913 = vmatpush3.msra.mxu1 %v649_v5 }
  0x5d   :  { %867 = vmatprep.subr.bf16.mxu0 %v991_v58  ;;  %914 = vmatprep.subr.mxu1 %v1093_v44 }
  0x5e   :  { %915 = vmatpush3.msra.mxu1 %v648_v6 }
  0x5f   :  { %916 = vmatprep.subr.mxu1 %v1093_v44 }
  0x60   :  { %868 = vmatpush3.bf16.msra.mxu0 %v992_v59  ;;  %917 = vmatpush3.msra.mxu1 %v647_v7 }
  0x61   :  { %869 = vmatprep.subr.bf16.mxu0 %v993_v60  ;;  %918 = vmatprep.subr.mxu1 %v1093_v44 }
  0x62   :  { %919 = vmatpush3.msra.mxu1 %v646_v8 }
  0x63   :  { %920 = vmatprep.subr.mxu1 %v1093_v44 }
  0x64   :  { %870 = vmatpush3.bf16.msra.mxu0 %v994_v61  ;;  %921 = vmatpush3.msra.mxu1 %v645_v9 }
  0x65   :  { %922 = vmatprep.subr.mxu1 %v1093_v44 }
  0x66   :  { %923 = vmatpush3.msra.mxu1 %v644_v10 }
  0x67   :  { %591 = vmatmul.mubr.bf16.vlgmr.msra.gmra.mxu0 %v72_v63  ;;  %924 = vmatprep.subr.mxu1 %v1093_v44 }
  0x68   :  { %925 = vmatpush3.msra.mxu1 %v643_v11 }
  0x69   :  { %926 = vmatprep.subr.mxu1 %v1093_v44 }
  0x6a   :  { %927 = vmatpush3.msra.mxu1 %v642_v12 }
  0x6b   :  { %928 = vmatprep.subr.mxu1 %v1093_v44 }
  0x6c   :  { %929 = vmatpush3.msra.mxu1 %v641_v13 }
  0x6d   :  { %930 = vmatprep.subr.mxu1 %v1093_v44 }
  0x6e   :  { %931 = vmatpush3.msra.mxu1 %v640_v14 }
  0x6f   :  { %932 = vmatprep.subr.mxu1 %v1093_v44 }
  0x70   :  { %933 = vmatpush3.msra.mxu1 %v639_v15 }
 0x107   :  { %v827_v16 = vpop.f32.mrf.mxu0 }
 0x109   :  { %v828_v17 = vpop.f32.mrf.mxu0  ;;  %v849_v18 = vpop.f32.mrf.mxu1 }
 0x10a   :  { %v829_v28 = vadd.f32 %v828_v17, %v827_v16 }
 0x10b   :  { %v830_v19 = vpop.f32.mrf.mxu0  ;;  %v850_v20 = vpop.f32.mrf.mxu1 }
 0x10c   :  { %v513_v30 = vadd.f32 %v829_v28, %v759_v29  ;;  %v851_v31 = vadd.f32 %v850_v20, %v849_v18 }
 0x10d   :  { %v831_v21 = vpop.f32.mrf.mxu0  ;;  %v852_v22 = vpop.f32.mrf.mxu1 }
 0x10e   :  { %v553_v34 = vadd.f32 %v851_v31, %v513_v30 }
 0x10f   :  { %v853_v23 = vpop.f32.mrf.mxu1 }
 0x111   :  { %v632_v24 = vpop.f32.mrf.mxu1 }
 0x113   :  { %v900_v25 = vpop.f32.mrf.mxu1 }
 0x115   :  { %v635_v26 = vpop.f32.mrf.mxu1 }
 0x117   :  { %v901_v27 = vpop.f32.mrf.mxu1 }
 0x127   :  { %v871_v32 = vpop.f32.mrf.mxu0 }
 0x129   :  { %v872_v33 = vpop.f32.mrf.mxu0 }
 0x12a   :  { %v873_v35 = vadd.f32 %v872_v33, %v871_v32 }
 0x12b   :  { %v874_v36 = vpop.f32.mrf.mxu0 }
 0x12c   :  { %v593_v37 = vadd.f32 %v873_v35, %v553_v34 }
 0x12d   :  { %v875_v38 = vpop.f32.mrf.mxu0 }
 0x12e   :  { %v633_v39 = vadd.f32 %v632_v24, %v593_v37 }
 0x130   :  { %v638_v40 = vmax.f32 %v633_v39, 0.0 }
 0x132   :  { %935 = vmatmul.mubr.f32.vlgmr.msra.gmra.mxu1 %v638_v40 }
 0x1f2   :  { %v728_v42 = vpop.f32.mrf.mxu1 }
 0x1f3   :  { %v729_v43 = vadd.f32 %v810_v41, %v728_v42 }
 0x1f4   :  { %v936_v44 = vpop.f32.mrf.mxu1 }
 0x1f5   :  { %732 = vmax.xlane.f32.xlu0 %v729_v43 }
 0x27e   :  { %v733_v45 = vpop.xlane.xlu0 %732 }
 0x27f   :  { %v734_v46 = vsub.f32 %v729_v43, %v733_v45 }
 0x281   :  { %v735_v47 = vmul.f32 1.442695, %v734_v46 }
 0x283   :  { %996 = vpow2.f32 %v735_v47 }
 0x290   :  { %v997_v48 = vpop.eup %996 }
 0x291   :  { %737 = vadd.xlane.f32.xlu0 %v997_v48 }
 0x31a   :  { %v738_v49 = vpop.xlane.xlu0 %737 }
 0x31b   :  { %998 = vlog2.f32 %v738_v49 }
 0x328   :  { %v999_v50 = vpop.eup %998 }
 0x329   :  { %v740_v51 = vmul.f32 0.6931472, %v999_v50 }
 0x32b   :  { %v741_v52 = vsub.f32 %v734_v46, %v740_v51 }
 0x32d   :  { %742 = vst [vmem:[#allocation8] sm:$0xff] %v741_v52 }
 0x32e   :  { %1071 = shalt.err (!%p1068_p5)
}
 0x32f   :  { %752 = dma.vmem_to_hbm [thread:$0]  %s750_s13, 128, %s1170_s5, [#allocation4]  }
 0x330   :  { %1084 = dma.done.wait [#allocation4], 128  }
 0x331   :  { %1085 = vsyncadd [#allocation4], 4294967168 }
 0x332   :  { %756 = vsyncpa [#allocation3], 1 }
 0x333   :  { %757 = vsyncpa [#allocation6], 1 }
 0x334   :  { %758 = vsyncpa [#allocation4], 1 }

</bundles_post_ra>
